<compile_context>
chip_gen: v6e
topology: v6e:2x2x1
jax: 0.10.0
libtpu: 0.0.40
codegen_flags: <defaults>
</compile_context>

<pallas_src>
import jax
import jax.numpy as jnp
from jax.experimental import pallas as pl
from jax.experimental.pallas import tpu as pltpu


def _round_up(n, m):
    return (n + m - 1) // m * m


# ---------------------------------------------------------------------------
# Kernel bodies
# ---------------------------------------------------------------------------
def ffn_resident_kernel(x_ref, w1_ref, b1_ref, w2_ref, b2_ref, o_ref):
    # x_ref : (tm, d_model_p)    token tile
    # w1_ref: (d_model_p, d_ff_p) full W1 (resident, constant index map)
    # b1_ref: (1, d_ff_p)
    # w2_ref: (d_ff_p, d_model_p) full W2 (resident)
    # b2_ref: (1, d_model_p)
    # o_ref : (tm, d_model_p)
    h = jnp.dot(x_ref[...], w1_ref[...], preferred_element_type=jnp.float32)
    h = jnp.maximum(h + b1_ref[...].astype(jnp.float32), 0.0)
    # Dropout == identity (eval mode).
    out = jnp.dot(h.astype(w2_ref.dtype), w2_ref[...],
                  preferred_element_type=jnp.float32)
    o_ref[...] = (out + b2_ref[...].astype(jnp.float32)).astype(o_ref.dtype)


def ffn_stream_kernel(x_ref, w1_ref, b1_ref, w2_ref, b2_ref, o_ref, acc_ref):
    # x_ref : (tm, d_model_p)         token tile (resident across k)
    # w1_ref: (d_model_p, tff)        W1 column tile (k-th slice of d_ff)
    # b1_ref: (1, tff)
    # w2_ref: (tff, d_model_p)        W2 row tile (k-th slice of d_ff)
    # b2_ref: (1, d_model_p)
    # o_ref : (tm, d_model_p)         output tile (resident across k)
    # acc_ref: (tm, d_model_p) f32    accumulator scratch
    k = pl.program_id(1)

    h = jnp.dot(x_ref[...], w1_ref[...], preferred_element_type=jnp.float32)
    h = jnp.maximum(h + b1_ref[...].astype(jnp.float32), 0.0)
    # Dropout == identity (eval mode).
    p = jnp.dot(h.astype(w2_ref.dtype), w2_ref[...],
                preferred_element_type=jnp.float32)

    # First k-step writes the partial product directly (no zero-init RMW).
    @pl.when(k == 0)
    def _():
        acc_ref[...] = p

    @pl.when(k > 0)
    def _():
        acc_ref[...] += p

    @pl.when(k == pl.num_programs(1) - 1)
    def _():
        o_ref[...] = (acc_ref[...]
                      + b2_ref[...].astype(jnp.float32)).astype(o_ref.dtype)


# ---------------------------------------------------------------------------
# Wrapper
# ---------------------------------------------------------------------------
def positionwise_ffn(x, w1, b1, w2, b2, *, tm=512, tff=1024,
                     resident_vmem_budget=40 << 20):
    """y = relu(x @ W1 + b1) @ W2 + b2   (dropout == identity, eval mode).

    x : (..., d_model)
    w1: (d_model, d_ff), b1: (d_ff,), w2: (d_ff, d_model), b2: (d_model,)
    Weights are stored pre-transposed vs. nn.Linear.
    """
    orig_shape = x.shape
    d_model = orig_shape[-1]
    d_ff = w1.shape[1]

    x2d = x.reshape(-1, d_model)
    n_tok = x2d.shape[0]

    x_isz = x2d.dtype.itemsize
    w_isz = w1.dtype.itemsize

    # Dtype-aware row alignment: f32 -> 8, bf16 -> 16, int8/fp8 -> 32 rows.
    row_align = max(8, 32 // x_isz)

    d_model_p = _round_up(d_model, 128)
    tm_eff = min(tm, _round_up(n_tok, row_align))   # don't over-pad tiny inputs
    n_tok_p = _round_up(n_tok, tm_eff)
    tff_eff = min(tff, _round_up(d_ff, 128))
    d_ff_p = _round_up(d_ff, tff_eff)
    n_row_tiles = n_tok_p // tm_eff

    # --- Path selection via conservative VMEM-footprint estimates -----------
    # (weights counted double-buffered even when their index map is constant)
    resident_bytes = (
        2 * 2 * d_model_p * d_ff_p * w_isz          # W1 + W2, double-buffered
        + 2 * 8 * (d_ff_p + d_model_p) * w_isz      # biases (sublane-padded)
        + 2 * 2 * tm_eff * d_model_p * x_isz        # x tile + out tile
        + tm_eff * d_ff_p * 4                       # f32 hidden activation
    )
    stream_bytes = (
        2 * 2 * d_model_p * tff_eff * w_isz         # W1/W2 tiles
        + 2 * 8 * (tff_eff + d_model_p) * w_isz
        + 2 * 2 * tm_eff * d_model_p * x_isz
        + tm_eff * tff_eff * 4                      # f32 hidden tile
        + tm_eff * d_model_p * 4                    # f32 accumulator scratch
    )
    use_resident = resident_bytes <= resident_vmem_budget
    est_bytes = resident_bytes if use_resident else stream_bytes
    # Explicit scoped-VMEM limit (v5e default is 16 MiB); keep below v7x's
    # 64 MiB per-TC physical VMEM.
    vmem_limit = int(min(max(est_bytes * 5 // 4, 32 << 20), 56 << 20))

    # --- Padding (skipped entirely when already aligned) --------------------
    # Zero padding is exact: padded x cols / W1 rows contribute 0 to h, padded
    # hidden units have b1=0 so relu(0)=0 and their W2 rows are 0, and padded
    # output columns are sliced off below.  For repeated calls with unaligned
    # weights, pre-pad the weights once at parameter setup instead.
    def pad2(a, r, c):
        if a.shape == (r, c):
            return a
        return jnp.pad(a, ((0, r - a.shape[0]), (0, c - a.shape[1])))

    def pad1(a, n):
        if a.shape[0] == n:
            return a.reshape(1, n)
        return jnp.pad(a, (0, n - a.shape[0])).reshape(1, n)

    x_p = pad2(x2d, n_tok_p, d_model_p)
    w1_p = pad2(w1, d_model_p, d_ff_p)
    b1_p = pad1(b1, d_ff_p)
    w2_p = pad2(w2, d_ff_p, d_model_p)
    b2_p = pad1(b2, d_model_p)

    # --- Cost estimate for the XLA scheduler ---------------------------------
    flops = 4 * n_tok_p * d_model_p * d_ff_p
    weight_reads = 1 if use_resident else n_row_tiles
    bytes_accessed = int(
        x_p.size * x_isz
        + weight_reads * (w1_p.size + w2_p.size) * w_isz
        + (b1_p.size + b2_p.size) * w_isz
        + n_tok_p * d_model_p * x_isz)
    cost = pl.CostEstimate(flops=flops, transcendentals=0,
                           bytes_accessed=bytes_accessed)

    if use_resident:
        # Weights DMA'd once and kept resident; one parallel grid axis over
        # token tiles (with long sequences n_row_tiles >= 2, so both v7x TCs
        # get work).
        out2d = pl.pallas_call(
            ffn_resident_kernel,
            out_shape=jax.ShapeDtypeStruct((n_tok_p, d_model_p), x.dtype),
            grid_spec=pltpu.PrefetchScalarGridSpec(
                num_scalar_prefetch=0,
                grid=(n_row_tiles,),
                in_specs=[
                    pl.BlockSpec((tm_eff, d_model_p), lambda i: (i, 0)),   # x
                    pl.BlockSpec((d_model_p, d_ff_p), lambda i: (0, 0)),   # W1
                    pl.BlockSpec((1, d_ff_p), lambda i: (0, 0)),           # b1
                    pl.BlockSpec((d_ff_p, d_model_p), lambda i: (0, 0)),   # W2
                    pl.BlockSpec((1, d_model_p), lambda i: (0, 0)),        # b2
                ],
                out_specs=pl.BlockSpec((tm_eff, d_model_p), lambda i: (i, 0)),
            ),
            compiler_params=pltpu.CompilerParams(
                dimension_semantics=("parallel",),
                vmem_limit_bytes=vmem_limit),
            cost_estimate=cost,
        )(x_p, w1_p, b1_p, w2_p, b2_p)
    else:
        grid = (n_row_tiles, d_ff_p // tff_eff)
        out2d = pl.pallas_call(
            ffn_stream_kernel,
            out_shape=jax.ShapeDtypeStruct((n_tok_p, d_model_p), x.dtype),
            grid_spec=pltpu.PrefetchScalarGridSpec(
                num_scalar_prefetch=0,
                grid=grid,
                in_specs=[
                    pl.BlockSpec((tm_eff, d_model_p), lambda i, k: (i, 0)),   # x
                    pl.BlockSpec((d_model_p, tff_eff), lambda i, k: (0, k)),  # W1[:,k]
                    pl.BlockSpec((1, tff_eff), lambda i, k: (0, k)),          # b1[k]
                    pl.BlockSpec((tff_eff, d_model_p), lambda i, k: (k, 0)),  # W2[k,:]
                    pl.BlockSpec((1, d_model_p), lambda i, k: (0, 0)),        # b2
                ],
                out_specs=pl.BlockSpec((tm_eff, d_model_p), lambda i, k: (i, 0)),
                scratch_shapes=[pltpu.VMEM((tm_eff, d_model_p), jnp.float32)],
            ),
            compiler_params=pltpu.CompilerParams(
                dimension_semantics=("parallel", "arbitrary"),
                vmem_limit_bytes=vmem_limit),
            cost_estimate=cost,
        )(x_p, w1_p, b1_p, w2_p, b2_p)

    return out2d[:n_tok, :d_model].reshape(orig_shape)


if __name__ == "__main__":
    # Small, deterministic example: batch=2, seq=8, d_model=32, d_ff=256
    batch, seq, d_model, d_ff = 2, 8, 32, 256

    key = jax.random.PRNGKey(0)
    kx, kw1, kb1, kw2, kb2 = jax.random.split(key, 5)

    x = jax.random.normal(kx, (batch, seq, d_model), dtype=jnp.float32)
    # nn.Linear init-style scaling (deterministic, synthetic)
    w1 = jax.random.normal(kw1, (d_model, d_ff), dtype=jnp.float32) * (1.0 / d_model ** 0.5)
    b1 = jax.random.normal(kb1, (d_ff,), dtype=jnp.float32) * 0.01
    w2 = jax.random.normal(kw2, (d_ff, d_model), dtype=jnp.float32) * (1.0 / d_ff ** 0.5)
    b2 = jax.random.normal(kb2, (d_model,), dtype=jnp.float32) * 0.01

    # Pure-JAX reference (eval-mode dropout == identity)
    ref = jnp.maximum(x @ w1 + b1, 0.0) @ w2 + b2

    # 1) Weights-resident fast path (default).
    out_res = jax.block_until_ready(positionwise_ffn(x, w1, b1, w2, b2))
    assert out_res.shape == x.shape
    assert jnp.allclose(out_res, ref, atol=1e-4, rtol=1e-4)

    # 2) Streaming path (forced), with 2 k-steps over d_ff to exercise the
    #    partial-write / accumulate logic.
    out_str = jax.block_until_ready(
        positionwise_ffn(x, w1, b1, w2, b2, tff=128, resident_vmem_budget=0))
    assert out_str.shape == x.shape
    assert jnp.allclose(out_str, ref, atol=1e-4, rtol=1e-4)

    print("KERNEL_OK")
</pallas_src>

<mosaic_0001>
module attributes {stable_mosaic.version = 11 : i64} {
  func.func @ffn_resident_kernel(%arg0: i32, %arg1: memref<16x128xf32, #tpu.memory_space<vmem>>, %arg2: memref<128x256xf32, #tpu.memory_space<vmem>>, %arg3: memref<1x256xf32, #tpu.memory_space<vmem>>, %arg4: memref<256x128xf32, #tpu.memory_space<vmem>>, %arg5: memref<1x128xf32, #tpu.memory_space<vmem>>, %arg6: memref<16x128xf32, #tpu.memory_space<vmem>>) attributes {dimension_semantics = [#tpu.dimension_semantics<parallel>], iteration_bounds = array<i64: 1>, scalar_prefetch = 0 : i64, scratch_operands = 0 : i64, tpu.core_type = #tpu.core_type<tc>, window_params = [{transform_indices = @transform_0, window_bounds = array<i64: 16, 128>}, {pipeline_mode = #tpu.pipeline_mode<synchronous>, transform_indices = @transform_1, window_bounds = array<i64: 128, 256>}, {pipeline_mode = #tpu.pipeline_mode<synchronous>, transform_indices = @transform_2, window_bounds = array<i64: 1, 256>}, {pipeline_mode = #tpu.pipeline_mode<synchronous>, transform_indices = @transform_3, window_bounds = array<i64: 256, 128>}, {pipeline_mode = #tpu.pipeline_mode<synchronous>, transform_indices = @transform_4, window_bounds = array<i64: 1, 128>}, {transform_indices = @transform_5, window_bounds = array<i64: 16, 128>}]} {
    %c0 = arith.constant 0 : index
    %c0_0 = arith.constant 0 : index
    %0 = vector.load %arg1[%c0, %c0_0] : memref<16x128xf32, #tpu.memory_space<vmem>>, vector<16x128xf32>
    %c0_1 = arith.constant 0 : index
    %c0_2 = arith.constant 0 : index
    %1 = vector.load %arg2[%c0_1, %c0_2] : memref<128x256xf32, #tpu.memory_space<vmem>>, vector<128x256xf32>
    %cst = arith.constant dense<0.000000e+00> : vector<16x256xf32>
    %2 = tpu.matmul %0, %1, %cst {dimension_numbers = #tpu.dot_dimension_numbers<[1], [0], [0], [1], [0, 0, 1, 1], [], []>} : vector<16x128xf32>, vector<128x256xf32>, vector<16x256xf32> -> vector<16x256xf32>
    %c0_3 = arith.constant 0 : index
    %c0_4 = arith.constant 0 : index
    %3 = vector.load %arg3[%c0_3, %c0_4] : memref<1x256xf32, #tpu.memory_space<vmem>>, vector<1x256xf32>
    %4 = vector.broadcast %3 : vector<1x256xf32> to vector<16x256xf32>
    %5 = arith.addf %2, %4 : vector<16x256xf32>
    %cst_5 = arith.constant 0.000000e+00 : f32
    %6 = vector.broadcast %cst_5 : f32 to vector<16x256xf32>
    %7 = arith.maximumf %5, %6 : vector<16x256xf32>
    %c0_6 = arith.constant 0 : index
    %c0_7 = arith.constant 0 : index
    %8 = vector.load %arg4[%c0_6, %c0_7] : memref<256x128xf32, #tpu.memory_space<vmem>>, vector<256x128xf32>
    %cst_8 = arith.constant dense<0.000000e+00> : vector<16x128xf32>
    %9 = tpu.matmul %7, %8, %cst_8 {dimension_numbers = #tpu.dot_dimension_numbers<[1], [0], [0], [1], [0, 0, 1, 1], [], []>} : vector<16x256xf32>, vector<256x128xf32>, vector<16x128xf32> -> vector<16x128xf32>
    %c0_9 = arith.constant 0 : index
    %c0_10 = arith.constant 0 : index
    %10 = vector.load %arg5[%c0_9, %c0_10] : memref<1x128xf32, #tpu.memory_space<vmem>>, vector<1x128xf32>
    %11 = vector.broadcast %10 : vector<1x128xf32> to vector<16x128xf32>
    %12 = arith.addf %9, %11 : vector<16x128xf32>
    %c0_11 = arith.constant 0 : index
    %c0_12 = arith.constant 0 : index
    %13 = vector.load %arg6[%c0_11, %c0_12] : memref<16x128xf32, #tpu.memory_space<vmem>>, vector<16x128xf32>
    tpu.vector_store %arg6[%c0_11, %c0_12], %12 {strides = array<i32>} : memref<16x128xf32, #tpu.memory_space<vmem>>, vector<16x128xf32>,
    return
  }
  func.func @transform_0(%arg0: i32) -> (i32, i32) {
    %c0_i32 = arith.constant 0 : i32
    %c0_i32_0 = arith.constant 0 : i32
    return %arg0, %c0_i32 : i32, i32
  }
  func.func @transform_1(%arg0: i32) -> (i32, i32) {
    %c0_i32 = arith.constant 0 : i32
    %c0_i32_0 = arith.constant 0 : i32
    %c0_i32_1 = arith.constant 0 : i32
    return %c0_i32, %c0_i32_0 : i32, i32
  }
  func.func @transform_2(%arg0: i32) -> (i32, i32) {
    %c0_i32 = arith.constant 0 : i32
    %c0_i32_0 = arith.constant 0 : i32
    %c0_i32_1 = arith.constant 0 : i32
    return %c0_i32, %c0_i32_0 : i32, i32
  }
  func.func @transform_3(%arg0: i32) -> (i32, i32) {
    %c0_i32 = arith.constant 0 : i32
    %c0_i32_0 = arith.constant 0 : i32
    %c0_i32_1 = arith.constant 0 : i32
    return %c0_i32, %c0_i32_0 : i32, i32
  }
  func.func @transform_4(%arg0: i32) -> (i32, i32) {
    %c0_i32 = arith.constant 0 : i32
    %c0_i32_0 = arith.constant 0 : i32
    %c0_i32_1 = arith.constant 0 : i32
    return %c0_i32, %c0_i32_0 : i32, i32
  }
  func.func @transform_5(%arg0: i32) -> (i32, i32) {
    %c0_i32 = arith.constant 0 : i32
    %c0_i32_0 = arith.constant 0 : i32
    return %arg0, %c0_i32 : i32, i32
  }
}

</mosaic_0001>

<bundles_post_ra>
// kernel: tpu_custom_call.1
= control target key start
LH: loop header
LB: loop body
LE: loop exit
PB: predicated region body
PF: predicated region fallthrough
CT: control target
= control target key end

     0   :  { %10 = vsyncpa [#allocation3], 0  ;;  %s525_s0 = inlined_call_operand.hbm [shape: f32[16,128], index: 0, kind: input, shape index: {}]   ;;  %s526_s1 = inlined_call_operand.hbm [shape: f32[128,256], index: 1, kind: input, shape index: {}]   ;;  %s527_s2 = inlined_call_operand.vmem [shape: f32[1,256], index: 2, kind: input, shape index: {}]   ;;  %s528_s3 = inlined_call_operand.hbm [shape: f32[256,128], index: 3, kind: input, shape index: {}]   ;;  %s529_s4 = inlined_call_operand.vmem [shape: f32[1,128], index: 4, kind: input, shape index: {}]   ;;  %s530_s5 = inlined_call_operand.hbm [shape: f32[16,128], index: 5, kind: output, shape index: {}]  }
   0x1   :  { %11 = vsyncpa [#allocation6], 0 }
   0x2   :  { %12 = vsyncpa [#allocation4], 0  ;;  %s457_s18 = smov [#allocation5]  }
   0x3   :  { %s30_s19 = sshll.u32 %s457_s18, 4  ;;  %s31_s19 = int_to_ptr.vmem [resolvable:$true] %s30_s19 }
   0x4   :  { %s379_s20 = scalar_lea.vmem %s31_s19, 4096  ;;  %p384_p1 = scmp.lt.s32.totalorder %s31_s19, %s31_s19 }
   0x5   :  { %p380_p0 = scmp.ne.s32.totalorder %s31_s19, %s379_s20  ;;  %p385_p2 = scmp.lt.s32.totalorder %s379_s20, %s379_s20 }
   0x7   :  { %p386_p3 = por %p385_p2, %p384_p1 }
   0x9   :  { %p387_p4 = pnand %p386_p3, %p380_p0 }
   0xb   :  { %390 = shalt.err (!%p387_p4)
}
   0xc   :  { %s458_s21 = smov 256   ;;  %s459_s22 = smov 16  }
   0xd   :  { %36 = dma.hbm_to_vmem [thread:$0]  %s526_s1, 4096, %s31_s19, [#allocation6], %s458_s21, %s458_s21, %s459_s22  }
   0xe   :  { %s460_s25 = smov [#allocation2]  }
   0xf   :  { %s18_s26 = sshll.u32 %s460_s25, 4  ;;  %s19_s26 = int_to_ptr.vmem [resolvable:$true] %s18_s26 }
  0x10   :  { %s399_s27 = scalar_lea.vmem %s19_s26, 256  ;;  %p404_p6 = scmp.lt.s32.totalorder %s19_s26, %s19_s26 }
  0x11   :  { %p400_p5 = scmp.ne.s32.totalorder %s19_s26, %s399_s27  ;;  %p405_p7 = scmp.lt.s32.totalorder %s399_s27, %s399_s27 }
  0x13   :  { %p406_p8 = por %p405_p7, %p404_p6 }
  0x15   :  { %p407_p9 = pnand %p406_p8, %p400_p5 }
  0x17   :  { %410 = shalt.err (!%p407_p9)
}
  0x18   :  { %s461_s28 = smov 128   ;;  %s462_s29 = smov 8  }
  0x19   :  { %24 = dma.hbm_to_vmem [thread:$0]  %s525_s0, 256, %s19_s26, [#allocation3], %s461_s28, %s461_s28, %s462_s29  }
  0x1a   :  { %s463_s1 = smov [#allocation7]  }
  0x1b   :  { %s44_s7 = sshll.u32 %s463_s1, 4  ;;  %s45_s7 = int_to_ptr.vmem [resolvable:$true] %s44_s7 }
  0x1c   :  { %s419_s8 = scalar_lea.vmem %s45_s7, 4096  ;;  %p424_p11 = scmp.lt.s32.totalorder %s45_s7, %s45_s7 }
  0x1d   :  { %p420_p10 = scmp.ne.s32.totalorder %s45_s7, %s419_s8  ;;  %p425_p12 = scmp.lt.s32.totalorder %s419_s8, %s419_s8 }
  0x1f   :  { %p426_p13 = por %p425_p12, %p424_p11 }
  0x21   :  { %p427_p0 = pnand %p426_p13, %p420_p10 }
  0x23   :  { %430 = shalt.err (!%p427_p0)
}
  0x24   :  { %50 = dma.hbm_to_vmem [thread:$0]  %s528_s3, 4096, %s45_s7, [#allocation6], %s461_s28, %s461_s28, %s462_s29  }
  0x25   :  { %451 = dma.done.wait [#allocation3], 256  }
  0x26   :  { %452 = vsyncadd [#allocation3], 4294967040 }
  0x27   :  { %453 = dma.done.wait [#allocation6], 8192  }
  0x28   :  { %454 = vsyncadd [#allocation6], 4294959104  ;;  %v464_v0 = vmov 0.0   ;;  %v95_v1 = vld [vmem:[#allocation5 + $0xf8] sm:$0xff]  ;;  %v94_v2 = vld [vmem:[#allocation5 + $0xf0] sm:$0xff]  ;;  %s465_s12 = smov [#allocation8]  }
  0x29   :  { %172 = vmatprep.mubr.f32.mxu0 %v464_v0  ;;  %v93_v3 = vld [vmem:[#allocation5 + $0xe8] sm:$0xff]  ;;  %108 = vmatprep.subr.mxu0 %v95_v1  ;;  %v92_v4 = vld [vmem:[#allocation5 + $0xe0] sm:$0xff]  ;;  %v91_v5 = vld [vmem:[#allocation5 + $0xd8] sm:$0xff]  ;;  %s310_s13 = sshll.u32 %s465_s12, 4  ;;  %s311_s13 = int_to_ptr.vmem [resolvable:$true] %s310_s13 }
  0x2a   :  { %109 = vmatpush1.msra.mxu0 %v94_v2  ;;  %v90_v6 = vld [vmem:[#allocation5 + $0xd0] sm:$0xff]  ;;  %v89_v7 = vld [vmem:[#allocation5 + $0xc8] sm:$0xff]  ;;  %v88_v8 = vld [vmem:[#allocation5 + $0xc0] sm:$0xff]  ;;  %s431_s14 = scalar_lea.vmem %s311_s13, 256  ;;  %p436_p2 = scmp.lt.s32.totalorder %s311_s13, %s311_s13 }
  0x2b   :  { %110 = vmatprep.subr.mxu0 %v93_v3  ;;  %v87_v9 = vld [vmem:[#allocation5 + $0xb8] sm:$0xff]  ;;  %v86_v10 = vld [vmem:[#allocation5 + $0xb0] sm:$0xff]  ;;  %v85_v11 = vld [vmem:[#allocation5 + $0xa8] sm:$0xff]  ;;  %p432_p1 = scmp.ne.s32.totalorder %s311_s13, %s431_s14  ;;  %p437_p3 = scmp.lt.s32.totalorder %s431_s14, %s431_s14 }
  0x2c   :  { %111 = vmatpush1.msra.mxu0 %v92_v4  ;;  %v84_v12 = vld [vmem:[#allocation5 + $0xa0] sm:$0xff]  ;;  %v83_v13 = vld [vmem:[#allocation5 + $0x98] sm:$0xff]  ;;  %v82_v14 = vld [vmem:[#allocation5 + $0x90] sm:$0xff] }
  0x2d   :  { %112 = vmatprep.subr.mxu0 %v91_v5  ;;  %v220_v15 = vld [vmem:[#allocation7 + $0xf8] sm:$0xff]  ;;  %v81_v17 = vld [vmem:[#allocation5 + $0x88] sm:$0xff]  ;;  %v219_v18 = vld [vmem:[#allocation7 + $0xf0] sm:$0xff]  ;;  %p438_p4 = por %p437_p3, %p436_p2 }
  0x2e   :  { %113 = vmatpush1.msra.mxu0 %v90_v6  ;;  %v204_v16 = vld [vmem:[#allocation7 + $0x78] sm:$0xff]  ;;  %324 = vmatprep.subr.mxu1 %v220_v15  ;;  %v203_v19 = vld [vmem:[#allocation7 + $0x70] sm:$0xff]  ;;  %v80_v20 = vld [vmem:[#allocation5 + $0x80] sm:$0xff] }
  0x2f   :  { %114 = vmatprep.subr.mxu0 %v89_v7  ;;  %325 = vmatpush3.msra.mxu1 %v204_v16  ;;  %v218_v21 = vld [vmem:[#allocation7 + $0xe8] sm:$0xff]  ;;  %v79_v22 = vld [vmem:[#allocation5 + $0x78] sm:$0xff]  ;;  %v78_v24 = vld [vmem:[#allocation5 + $0x70] sm:$0xff]  ;;  %p439_p5 = pnand %p438_p4, %p432_p1 }
  0x30   :  { %115 = vmatpush1.msra.mxu0 %v88_v8  ;;  %326 = vmatprep.subr.mxu1 %v219_v18  ;;  %v202_v23 = vld [vmem:[#allocation7 + $0x68] sm:$0xff]  ;;  %v217_v25 = vld [vmem:[#allocation7 + $0xe0] sm:$0xff]  ;;  %v216_v29 = vld [vmem:[#allocation7 + $0xd8] sm:$0xff] }
  0x31   :  { %116 = vmatprep.subr.mxu0 %v87_v9  ;;  %327 = vmatpush3.msra.mxu1 %v203_v19  ;;  %v77_v26 = vld [vmem:[#allocation5 + $0x68] sm:$0xff]  ;;  %v201_v27 = vld [vmem:[#allocation7 + $0x60] sm:$0xff]  ;;  %v75_v30 = vld [vmem:[#allocation5 + $0x58] sm:$0xff] }
  0x32   :  { %117 = vmatpush1.msra.mxu0 %v86_v10  ;;  %328 = vmatprep.subr.mxu1 %v218_v21  ;;  %v76_v28 = vld [vmem:[#allocation5 + $0x60] sm:$0xff]  ;;  %v200_v31 = vld [vmem:[#allocation7 + $0x58] sm:$0xff]  ;;  %v74_v32 = vld [vmem:[#allocation5 + $0x50] sm:$0xff] }
  0x33   :  { %118 = vmatprep.subr.mxu0 %v85_v11  ;;  %329 = vmatpush3.msra.mxu1 %v202_v23  ;;  %v215_v33 = vld [vmem:[#allocation7 + $0xd0] sm:$0xff]  ;;  %v73_v34 = vld [vmem:[#allocation5 + $0x48] sm:$0xff]  ;;  %v72_v36 = vld [vmem:[#allocation5 + $0x40] sm:$0xff] }
  0x34   :  { %119 = vmatpush1.msra.mxu0 %v84_v12  ;;  %330 = vmatprep.subr.mxu1 %v217_v25  ;;  %v199_v35 = vld [vmem:[#allocation7 + $0x50] sm:$0xff]  ;;  %v214_v37 = vld [vmem:[#allocation7 + $0xc8] sm:$0xff]  ;;  %v71_v38 = vld [vmem:[#allocation5 + $0x38] sm:$0xff] }
  0x35   :  { %120 = vmatprep.subr.mxu0 %v83_v13  ;;  %331 = vmatpush3.msra.mxu1 %v201_v27  ;;  %v198_v39 = vld [vmem:[#allocation7 + $0x48] sm:$0xff]  ;;  %v70_v40 = vld [vmem:[#allocation5 + $0x30] sm:$0xff]  ;;  %v213_v41 = vld [vmem:[#allocation7 + $0xc0] sm:$0xff] }
  0x36   :  { %121 = vmatpush1.msra.mxu0 %v82_v14  ;;  %332 = vmatprep.subr.mxu1 %v216_v29  ;;  %v69_v42 = vld [vmem:[#allocation5 + $0x28] sm:$0xff]  ;;  %v197_v43 = vld [vmem:[#allocation7 + $0x40] sm:$0xff]  ;;  %v212_v45 = vld [vmem:[#allocation7 + $0xb8] sm:$0xff] }
  0x37   :  { %122 = vmatprep.subr.mxu0 %v81_v17  ;;  %333 = vmatpush3.msra.mxu1 %v200_v31  ;;  %v68_v44 = vld [vmem:[#allocation5 + $0x20] sm:$0xff]  ;;  %v67_v46 = vld [vmem:[#allocation5 + $0x18] sm:$0xff]  ;;  %v66_v48 = vld [vmem:[#allocation5 + $0x10] sm:$0xff] }
  0x38   :  { %123 = vmatpush1.msra.mxu0 %v80_v20  ;;  %334 = vmatprep.subr.mxu1 %v215_v33  ;;  %v196_v47 = vld [vmem:[#allocation7 + $0x38] sm:$0xff]  ;;  %v211_v49 = vld [vmem:[#allocation7 + $0xb0] sm:$0xff]  ;;  %v65_v50 = vld [vmem:[#allocation5 + $0x8] sm:$0xff] }
  0x39   :  { %124 = vmatprep.subr.mxu0 %v79_v22  ;;  %335 = vmatpush3.msra.mxu1 %v199_v35  ;;  %v195_v51 = vld [vmem:[#allocation7 + $0x30] sm:$0xff]  ;;  %v64_v52 = vld [vmem:[#allocation5] sm:$0xff]  ;;  %v210_v53 = vld [vmem:[#allocation7 + $0xa8] sm:$0xff] }
  0x3a   :  { %125 = vmatpush1.msra.mxu0 %v78_v24  ;;  %336 = vmatprep.subr.mxu1 %v214_v37  ;;  %v62_v54 = vld [vmem:[#allocation2] sm:$0xff]  ;;  %v194_v55 = vld [vmem:[#allocation7 + $0x28] sm:$0xff]  ;;  %v209_v56 = vld [vmem:[#allocation7 + $0xa0] sm:$0xff] }
  0x3b   :  { %126 = vmatprep.subr.mxu0 %v77_v26  ;;  %337 = vmatpush3.msra.mxu1 %v198_v39  ;;  %v193_v57 = vld [vmem:[#allocation7 + $0x20] sm:$0xff]  ;;  %v63_v58 = vld [vmem:[#allocation2 + $0x8] sm:$0xff]  ;;  %v207_v61 = vld [vmem:[#allocation7 + $0x90] sm:$0xff] }
  0x3c   :  { %127 = vmatpush1.msra.mxu0 %v76_v28  ;;  %338 = vmatprep.subr.mxu1 %v213_v41  ;;  %v208_v59 = vld [vmem:[#allocation7 + $0x98] sm:$0xff]  ;;  %v191_v62 = vld [vmem:[#allocation7 + $0x10] sm:$0xff]  ;;  %v206_v63 = vld [vmem:[#allocation7 + $0x88] sm:$0xff] }
  0x3d   :  { %128 = vmatprep.subr.mxu0 %v75_v30  ;;  %339 = vmatpush3.msra.mxu1 %v197_v43  ;;  %v192_v60 = vld [vmem:[#allocation7 + $0x18] sm:$0xff]  ;;  %v190_v1 = vld [vmem:[#allocation7 + $0x8] sm:$0xff]  ;;  %v205_v2 = vld [vmem:[#allocation7 + $0x80] sm:$0xff] }
  0x3e   :  { %129 = vmatpush1.msra.mxu0 %v74_v32  ;;  %340 = vmatprep.subr.mxu1 %v212_v45  ;;  %v189_v3 = vld [vmem:[#allocation7] sm:$0xff]  ;;  %v96_v6 = vld [vmem:[%s527_s2] sm:$0x3] }
  0x3f   :  { %130 = vmatprep.subr.mxu0 %v73_v34  ;;  %341 = vmatpush3.msra.mxu1 %v196_v47  ;;  %v323_v23 = vld [vmem:[%s529_s4] ss:$0 sm:$0xff] }
  0x40   :  { %131 = vmatpush1.msra.mxu0 %v72_v36  ;;  %342 = vmatprep.subr.mxu1 %v211_v49 }
  0x41   :  { %132 = vmatprep.subr.mxu0 %v71_v38  ;;  %343 = vmatpush3.msra.mxu1 %v195_v51 }
  0x42   :  { %133 = vmatpush1.msra.mxu0 %v70_v40  ;;  %344 = vmatprep.subr.mxu1 %v210_v53 }
  0x43   :  { %134 = vmatprep.subr.mxu0 %v69_v42  ;;  %345 = vmatpush3.msra.mxu1 %v194_v55 }
  0x44   :  { %135 = vmatpush1.msra.mxu0 %v68_v44  ;;  %346 = vmatprep.subr.mxu1 %v209_v56 }
  0x45   :  { %136 = vmatprep.subr.mxu0 %v67_v46  ;;  %347 = vmatpush3.msra.mxu1 %v193_v57 }
  0x46   :  { %137 = vmatpush1.msra.mxu0 %v66_v48  ;;  %348 = vmatprep.subr.mxu1 %v208_v59 }
  0x47   :  { %138 = vmatprep.subr.mxu0 %v65_v50  ;;  %349 = vmatpush3.msra.mxu1 %v192_v60 }
  0x48   :  { %139 = vmatpush1.msra.mxu0 %v64_v52  ;;  %350 = vmatprep.subr.mxu1 %v207_v61 }
  0x49   :  { %173 = vmatmul.mubr.f32.vlgmr.msra.gmra.mxu0 %v62_v54  ;;  %351 = vmatpush3.msra.mxu1 %v191_v62 }
  0x4a   :  { %178 = vmatprep.mubr.f32.mxu0 %v464_v0  ;;  %352 = vmatprep.subr.mxu1 %v206_v63  ;;  %v98_v0 = vlaneseq }
  0x4b   :  { %353 = vmatpush3.msra.mxu1 %v190_v1 }
  0x4c   :  { %354 = vmatprep.subr.mxu1 %v205_v2  ;;  %v99_v4 = vshrl.u32 %v98_v0, 7 }
  0x4d   :  { %179 = vmatmul.mubr.f32.gmra.mxu0 %v63_v58  ;;  %355 = vmatpush3.msra.mxu1 %v189_v3 }
  0x4e   :  { %v100_v5 = vsub.s32 0, %v99_v4  ;;  %v104_v7 = vsub.s32 1, %v99_v4 }
  0x50   :  { %v101_v8 = vrot.slane %v96_v6, %v100_v5  ;;  %v105_v9 = vrot.slane %v96_v6, %v104_v7 }
 0x109   :  { %v174_v10 = vpop.f32.mrf.mxu0 }
 0x10a   :  { %v175_v11 = vadd.f32 %v174_v10, %v101_v8 }
 0x10b   :  { %v176_v12 = vpop.f32.mrf.mxu0 }
 0x10c   :  { %v177_v13 = vadd.f32 %v176_v12, %v105_v9  ;;  %v185_v16 = vmax.f32 %v175_v11, 0.0 }
 0x10d   :  { %v180_v14 = vpop.f32.mrf.mxu0 }
 0x10e   :  { %v186_v15 = vmax.f32 %v177_v13, 0.0  ;;  %v181_v17 = vadd.f32 %v180_v14, %v101_v8 }
 0x10f   :  { %v182_v18 = vpop.f32.mrf.mxu0 }
 0x110   :  { %v183_v19 = vadd.f32 %v182_v18, %v105_v9  ;;  %292 = vmatprep.mubr.f32.mxu1 %v186_v15  ;;  %v187_v21 = vmax.f32 %v181_v17, 0.0 }
 0x111   :  { %293 = vmatmul.mubr.f32.vlgmr.msra.gmra.mxu1 %v185_v16 }
 0x112   :  { %v188_v20 = vmax.f32 %v183_v19, 0.0 }
 0x114   :  { %297 = vmatprep.mubr.f32.mxu1 %v188_v20 }
 0x115   :  { %298 = vmatmul.mubr.f32.gmra.mxu1 %v187_v21 }
 0x1d1   :  { %v356_v22 = vpop.f32.mrf.mxu1 }
 0x1d3   :  { %v357_v24 = vpop.f32.mrf.mxu1 }
 0x1d4   :  { %v358_v25 = vadd.f32 %v357_v24, %v356_v22 }
 0x1d5   :  { %v359_v26 = vpop.f32.mrf.mxu1 }
 0x1d6   :  { %v295_v27 = vadd.f32 %v358_v25, %v323_v23 }
 0x1d7   :  { %v360_v28 = vpop.f32.mrf.mxu1 }
 0x1d8   :  { %303 = vst [vmem:[#allocation8] sm:$0xff] %v295_v27  ;;  %v361_v29 = vadd.f32 %v360_v28, %v359_v26 }
 0x1da   :  { %v300_v30 = vadd.f32 %v361_v29, %v323_v23 }
 0x1dc   :  { %304 = vst [vmem:[#allocation8 + $0x8] sm:$0xff] %v300_v30 }
 0x1dd   :  { %442 = shalt.err (!%p439_p5)
}
 0x1de   :  { %316 = dma.vmem_to_hbm [thread:$0]  %s311_s13, 256, %s530_s5, [#allocation4], %s461_s28, %s461_s28, %s462_s29  }
 0x1df   :  { %455 = dma.done.wait [#allocation4], 256  }
 0x1e0   :  { %456 = vsyncadd [#allocation4], 4294967040 }
 0x1e1   :  { %320 = vsyncpa [#allocation3], 1 }
 0x1e2   :  { %321 = vsyncpa [#allocation6], 1 }
 0x1e3   :  { %322 = vsyncpa [#allocation4], 1 }

</bundles_post_ra>
